<compile_context>
chip_gen: v7x
topology: tpu7x:2x2x1
jax: 0.10.0
libtpu: 0.0.40
codegen_flags: <defaults>
</compile_context>

<pallas_src>
import jax
import jax.numpy as jnp
from jax.experimental import pallas as pl
from jax.experimental.pallas import tpu as pltpu


_SLOPE = 0.1  # the module uses nn.LeakyReLU(0.1) explicitly


def _leaky_relu(x, slope=_SLOPE):
    return jnp.where(x > 0, x, slope * x)


def stem_kernel(x_ref,
                w1_ref, b1_ref,
                w2_ref, b2_ref,
                w3_ref, b3_ref,
                h_ref):
    """Layers 1-3 (3 -> 128 -> 256 -> 512), run once, output h in bf16."""
    x = x_ref[...].astype(jnp.bfloat16)                               # (B, 3)
    h = jnp.dot(x, w1_ref[...], preferred_element_type=jnp.float32) + b1_ref[...]
    h = _leaky_relu(h)                                                # (B, 128) f32
    h = jnp.dot(h.astype(jnp.bfloat16), w2_ref[...],
                preferred_element_type=jnp.float32) + b2_ref[...]
    h = _leaky_relu(h)                                                # (B, 256) f32
    h = jnp.dot(h.astype(jnp.bfloat16), w3_ref[...],
                preferred_element_type=jnp.float32) + b3_ref[...]
    h = _leaky_relu(h)                                                # (B, 512) f32
    h_ref[...] = h.astype(jnp.bfloat16)


def head_kernel(h_ref, w4_ref, b4_ref, o_ref):
    """Final layer: dot(h, one streamed (512, TN) bf16 slab of w4) -> sigmoid."""
    y = jnp.dot(h_ref[...], w4_ref[...],
                preferred_element_type=jnp.float32) + b4_ref[...]     # (B, TN) f32
    o_ref[...] = jax.nn.sigmoid(y)


def _round_up(x, m):
    return ((x + m - 1) // m) * m


def _pick_tile(out_dim, max_tn=8192, min_tn=1024):
    """Return (TN, out_pad): lane-dense tile width and padded output width.

    Keeps every w4 slab <= 512*8192*2B = 8 MiB (16 MiB double-buffered), well
    under v7x's 64 MiB VMEM, while avoiding tiny tiles (per-step overhead).
    """
    out128 = _round_up(out_dim, 128)
    if out128 <= max_tn:
        return out128, out128
    # Prefer the largest lane-dense divisor of out128 (zero extra padding).
    for t in range(max_tn, min_tn - 1, -128):
        if out128 % t == 0:
            return t, out128
    # No large divisor: accept a little extra column padding, keep big tiles.
    return max_tn, _round_up(out128, max_tn)


def temperature_field_predictor(design_points, params, image_size):
    """design_points: (B, 3) float32 -> (B, 3, H, W) float32."""
    H, W = image_size
    out_dim = 3 * H * W
    B = design_points.shape[0]

    # Pad batch to a multiple of 8 (f32 sublane) -> no masked partial stores.
    B_pad = max(8, _round_up(B, 8))
    x = jnp.zeros((B_pad, 3), jnp.float32).at[:B].set(
        design_points.astype(jnp.float32))

    w1, b1, w2, b2, w3, b3, w4, b4 = params
    # bf16 weights halve the HBM->VMEM streaming bytes; accumulation stays f32.
    w1, w2, w3, w4 = (w.astype(jnp.bfloat16) for w in (w1, w2, w3, w4))
    b1, b2, b3, b4 = (b.astype(jnp.float32) for b in (b1, b2, b3, b4))

    TN, out_pad = _pick_tile(out_dim)
    n_tiles = out_pad // TN

    # Zero-pad the final layer's columns so every tile is full and lane-dense.
    if out_pad != out_dim:
        w4 = jnp.zeros((512, out_pad), jnp.bfloat16).at[:, :out_dim].set(w4)
        b4 = jnp.zeros((1, out_pad), jnp.float32).at[:, :out_dim].set(b4)

    # ---- stem: layers 1-3, computed once (everything fits trivially in VMEM)
    h = pl.pallas_call(
        stem_kernel,
        out_shape=jax.ShapeDtypeStruct((B_pad, 512), jnp.bfloat16),
    )(x, w1, b1, w2, b2, w3, b3)

    # ---- head: tiled GEMV over w4, streamed & double-buffered by BlockSpec
    in_specs = [
        pl.BlockSpec((B_pad, 512), lambda j: (0, 0)),   # h: constant block
        pl.BlockSpec((512, TN), lambda j: (0, j)),      # w4 slab
        pl.BlockSpec((1, TN), lambda j: (0, j)),        # b4 slab
    ]
    out_specs = pl.BlockSpec((B_pad, TN), lambda j: (0, j))

    # Head-only cost (stem is negligible); sigmoid ~= exp + reciprocal.
    flops = 2 * B_pad * 512 * out_pad
    bytes_accessed = (512 * out_pad * 2          # w4 (bf16)
                      + out_pad * 4              # b4
                      + B_pad * 512 * 2          # h
                      + B_pad * out_pad * 4)     # output
    cost = pl.CostEstimate(flops=flops,
                           transcendentals=2 * B_pad * out_pad,
                           bytes_accessed=bytes_accessed)

    # Scoped VMEM: double-buffered w4 slab + bias + output slab, plus headroom.
    w4_slab = 512 * TN * 2
    b4_slab = 8 * TN * 4
    out_slab = B_pad * TN * 4
    vmem_limit = int(2 * (w4_slab + b4_slab + out_slab)
                     + B_pad * 512 * 2 + (8 << 20))

    flat = pl.pallas_call(
        head_kernel,
        out_shape=jax.ShapeDtypeStruct((B_pad, out_pad), jnp.float32),
        grid=(n_tiles,),
        in_specs=in_specs,
        out_specs=out_specs,
        compiler_params=pltpu.CompilerParams(
            dimension_semantics=("parallel",),   # megacore: both TCs take slabs
            vmem_limit_bytes=vmem_limit),
        cost_estimate=cost,
    )(h, w4, b4)

    # Glue: matches torch `output.view(-1, 3, H, W)` (NCHW).
    return flat[:B, :out_dim].reshape(B, 3, H, W)


def init_params(key, image_size):
    """Synthetic init mimicking nn.Linear default (U[-1/sqrt(fan_in), +])."""
    H, W = image_size
    dims = [3, 128, 256, 512, 3 * H * W]
    params = []
    for i in range(4):
        fan_in, fan_out = dims[i], dims[i + 1]
        key, kw, kb = jax.random.split(key, 3)
        bound = 1.0 / float(jnp.sqrt(float(fan_in)))
        w = jax.random.uniform(kw, (fan_in, fan_out), jnp.float32, -bound, bound)
        b = jax.random.uniform(kb, (1, fan_out), jnp.float32, -bound, bound)
        params.extend([w, b])
    return tuple(params)


def reference_forward(design_points, params, image_size):
    """Pure-JAX reference mirroring the kernel's dtypes (bf16 weights, f32 accum)."""
    H, W = image_size
    w1, b1, w2, b2, w3, b3, w4, b4 = params
    w1, w2, w3, w4 = (w.astype(jnp.bfloat16) for w in (w1, w2, w3, w4))
    h = design_points.astype(jnp.bfloat16)
    h = _leaky_relu(jnp.dot(h, w1, preferred_element_type=jnp.float32) + b1)
    h = _leaky_relu(jnp.dot(h.astype(jnp.bfloat16), w2,
                            preferred_element_type=jnp.float32) + b2)
    h = _leaky_relu(jnp.dot(h.astype(jnp.bfloat16), w3,
                            preferred_element_type=jnp.float32) + b3)
    y = jnp.dot(h.astype(jnp.bfloat16), w4,
                preferred_element_type=jnp.float32) + b4
    return jax.nn.sigmoid(y).reshape(-1, 3, H, W)


if __name__ == "__main__":
    key = jax.random.PRNGKey(0)

    # Two small configs: (16,16) exercises the exact-tile path, (10,10)
    # (out_dim = 300, not a multiple of 128) exercises the padded-column path.
    for image_size in [(16, 16), (10, 10)]:
        batch = 2
        key, kx, kp = jax.random.split(key, 3)
        design_points = jax.random.normal(kx, (batch, 3), jnp.float32)
        params = init_params(kp, image_size)

        out = jax.block_until_ready(
            temperature_field_predictor(design_points, params, image_size))
        ref = reference_forward(design_points, params, image_size)

        H, W = image_size
        assert out.shape == (batch, 3, H, W), out.shape
        err = float(jnp.max(jnp.abs(out - ref)))
        assert jnp.allclose(out, ref, atol=2e-3, rtol=0.0), \
            f"image_size={image_size}: max |err| = {err}"

    print("KERNEL_OK")
</pallas_src>

<mosaic_0001>
module attributes {stable_mosaic.version = 11 : i64} {
  func.func @stem_kernel(%arg0: memref<8x3xf32, #tpu.memory_space<vmem>>, %arg1: memref<3x128xbf16, #tpu.memory_space<vmem>>, %arg2: memref<1x128xf32, #tpu.memory_space<vmem>>, %arg3: memref<128x256xbf16, #tpu.memory_space<vmem>>, %arg4: memref<1x256xf32, #tpu.memory_space<vmem>>, %arg5: memref<256x512xbf16, #tpu.memory_space<vmem>>, %arg6: memref<1x512xf32, #tpu.memory_space<vmem>>, %arg7: memref<8x512xbf16, #tpu.memory_space<vmem>>) attributes {dimension_semantics = [], scalar_prefetch = 0 : i64, scratch_operands = 0 : i64, tpu.core_type = #tpu.core_type<tc>} {
    %c0 = arith.constant 0 : index
    %c0_0 = arith.constant 0 : index
    %0 = vector.load %arg0[%c0, %c0_0] : memref<8x3xf32, #tpu.memory_space<vmem>>, vector<8x3xf32>
    %1 = arith.truncf %0 : vector<8x3xf32> to vector<8x3xbf16>
    %c0_1 = arith.constant 0 : index
    %c0_2 = arith.constant 0 : index
    %2 = vector.load %arg1[%c0_1, %c0_2] : memref<3x128xbf16, #tpu.memory_space<vmem>>, vector<3x128xbf16>
    %cst = arith.constant dense<0.000000e+00> : vector<8x128xf32>
    %3 = tpu.matmul %1, %2, %cst {dimension_numbers = #tpu.dot_dimension_numbers<[1], [0], [0], [1], [0, 0, 1, 1], [], []>} : vector<8x3xbf16>, vector<3x128xbf16>, vector<8x128xf32> -> vector<8x128xf32>
    %c0_3 = arith.constant 0 : index
    %c0_4 = arith.constant 0 : index
    %4 = vector.load %arg2[%c0_3, %c0_4] : memref<1x128xf32, #tpu.memory_space<vmem>>, vector<1x128xf32>
    %5 = vector.broadcast %4 : vector<1x128xf32> to vector<8x128xf32>
    %6 = arith.addf %3, %5 : vector<8x128xf32>
    %cst_5 = arith.constant 0.000000e+00 : f32
    %7 = vector.broadcast %cst_5 : f32 to vector<8x128xf32>
    %8 = arith.cmpf ogt, %6, %7 : vector<8x128xf32>
    %cst_6 = arith.constant 1.000000e-01 : f32
    %9 = vector.broadcast %cst_6 : f32 to vector<8x128xf32>
    %10 = arith.mulf %9, %6 : vector<8x128xf32>
    %11 = arith.select %8, %6, %10 : vector<8x128xi1>, vector<8x128xf32>
    %12 = arith.truncf %11 : vector<8x128xf32> to vector<8x128xbf16>
    %c0_7 = arith.constant 0 : index
    %c0_8 = arith.constant 0 : index
    %13 = vector.load %arg3[%c0_7, %c0_8] : memref<128x256xbf16, #tpu.memory_space<vmem>>, vector<128x256xbf16>
    %cst_9 = arith.constant dense<0.000000e+00> : vector<8x256xf32>
    %14 = tpu.matmul %12, %13, %cst_9 {dimension_numbers = #tpu.dot_dimension_numbers<[1], [0], [0], [1], [0, 0, 1, 1], [], []>} : vector<8x128xbf16>, vector<128x256xbf16>, vector<8x256xf32> -> vector<8x256xf32>
    %c0_10 = arith.constant 0 : index
    %c0_11 = arith.constant 0 : index
    %15 = vector.load %arg4[%c0_10, %c0_11] : memref<1x256xf32, #tpu.memory_space<vmem>>, vector<1x256xf32>
    %16 = vector.broadcast %15 : vector<1x256xf32> to vector<8x256xf32>
    %17 = arith.addf %14, %16 : vector<8x256xf32>
    %cst_12 = arith.constant 0.000000e+00 : f32
    %18 = vector.broadcast %cst_12 : f32 to vector<8x256xf32>
    %19 = arith.cmpf ogt, %17, %18 : vector<8x256xf32>
    %cst_13 = arith.constant 1.000000e-01 : f32
    %20 = vector.broadcast %cst_13 : f32 to vector<8x256xf32>
    %21 = arith.mulf %20, %17 : vector<8x256xf32>
    %22 = arith.select %19, %17, %21 : vector<8x256xi1>, vector<8x256xf32>
    %23 = arith.truncf %22 : vector<8x256xf32> to vector<8x256xbf16>
    %c0_14 = arith.constant 0 : index
    %c0_15 = arith.constant 0 : index
    %24 = vector.load %arg5[%c0_14, %c0_15] : memref<256x512xbf16, #tpu.memory_space<vmem>>, vector<256x512xbf16>
    %cst_16 = arith.constant dense<0.000000e+00> : vector<8x512xf32>
    %25 = tpu.matmul %23, %24, %cst_16 {dimension_numbers = #tpu.dot_dimension_numbers<[1], [0], [0], [1], [0, 0, 1, 1], [], []>} : vector<8x256xbf16>, vector<256x512xbf16>, vector<8x512xf32> -> vector<8x512xf32>
    %c0_17 = arith.constant 0 : index
    %c0_18 = arith.constant 0 : index
    %26 = vector.load %arg6[%c0_17, %c0_18] : memref<1x512xf32, #tpu.memory_space<vmem>>, vector<1x512xf32>
    %27 = vector.broadcast %26 : vector<1x512xf32> to vector<8x512xf32>
    %28 = arith.addf %25, %27 : vector<8x512xf32>
    %cst_19 = arith.constant 0.000000e+00 : f32
    %29 = vector.broadcast %cst_19 : f32 to vector<8x512xf32>
    %30 = arith.cmpf ogt, %28, %29 : vector<8x512xf32>
    %cst_20 = arith.constant 1.000000e-01 : f32
    %31 = vector.broadcast %cst_20 : f32 to vector<8x512xf32>
    %32 = arith.mulf %31, %28 : vector<8x512xf32>
    %33 = arith.select %30, %28, %32 : vector<8x512xi1>, vector<8x512xf32>
    %34 = arith.truncf %33 : vector<8x512xf32> to vector<8x512xbf16>
    %c0_21 = arith.constant 0 : index
    %c0_22 = arith.constant 0 : index
    %35 = vector.load %arg7[%c0_21, %c0_22] : memref<8x512xbf16, #tpu.memory_space<vmem>>, vector<8x512xbf16>
    tpu.vector_store %arg7[%c0_21, %c0_22], %34 {strides = array<i32>} : memref<8x512xbf16, #tpu.memory_space<vmem>>, vector<8x512xbf16>,
    return
  }
}

</mosaic_0001>

<bundles_post_ra>
// kernel: tpu_custom_call.1
= control target key start
LH: loop header
LB: loop body
LE: loop exit
PB: predicated region body
PF: predicated region fallthrough
CT: control target
= control target key end

     0   :  { %12 = vsyncpa [#allocation3], 0  ;;  %s1211_s0 = inlined_call_operand.vmem [shape: f32[8,3], index: 0, kind: input, shape index: {}]   ;;  %s1212_s1 = inlined_call_operand.vmem [shape: bf16[3,128], index: 1, kind: input, shape index: {}]   ;;  %s1213_s2 = inlined_call_operand.vmem [shape: f32[1,128], index: 2, kind: input, shape index: {}]   ;;  %s1214_s3 = inlined_call_operand.hbm [shape: bf16[128,256], index: 3, kind: input, shape index: {}]   ;;  %s1215_s4 = inlined_call_operand.vmem [shape: f32[1,256], index: 4, kind: input, shape index: {}]   ;;  %s1216_s5 = inlined_call_operand.hbm [shape: bf16[256,512], index: 5, kind: input, shape index: {}]   ;;  %s1217_s6 = inlined_call_operand.vmem [shape: f32[1,512], index: 6, kind: input, shape index: {}]   ;;  %s1218_s7 = inlined_call_operand.hbm [shape: bf16[8,512], index: 7, kind: output, shape index: {}]  }
   0x1   :  { %13 = vsyncpa [#allocation6], 0 }
   0x2   :  { %14 = vsyncpa [#allocation4], 0  ;;  %s1109_s24 = smov [#allocation2]   ;;  %s1037_s28 = scalar_lea.hbm %s1214_s3, 2048 }
   0x3   :  { %s26_s25 = sshll.u32 %s1109_s24, 4  ;;  %p1038_p0 = scmp.ne.s32.totalorder %s1214_s3, %s1037_s28  ;;  %s27_s25 = int_to_ptr.vmem [resolvable:$true] %s26_s25 }
   0x4   :  { %p1041_p1 = scmp.lt.u32.totalorder %s1037_s28, %s1214_s3 }
   0x6   :  { %p1043_p2 = pnand %p1041_p1, %p1038_p0 }
   0x8   :  { %1046 = shalt.err (!%p1043_p2)
}
   0x9   :  { %s1047_s10 = scalar_lea.vmem %s27_s25, 2048  ;;  %p1052_p4 = scmp.lt.s32.totalorder %s27_s25, %s27_s25 }
   0xa   :  { %p1048_p3 = scmp.ne.s32.totalorder %s27_s25, %s1047_s10  ;;  %p1053_p5 = scmp.lt.s32.totalorder %s1047_s10, %s1047_s10 }
   0xc   :  { %p1054_p6 = por %p1053_p5, %p1052_p4 }
   0xe   :  { %p1055_p7 = pnand %p1054_p6, %p1048_p3 }
  0x10   :  { %1058 = shalt.err (!%p1055_p7)
}
  0x11   :  { %s1110_s11 = smov 128   ;;  %s1111_s12 = smov 8  }
  0x12   :  { %32 = dma.hbm_to_vmem [thread:$0]  %s1214_s3, 2048, %s27_s25, [#allocation3], %s1110_s11, %s1110_s11, %s1111_s12  }
  0x13   :  { %s1112_s15 = smov [#allocation5]   ;;  %s1059_s19 = scalar_lea.hbm %s1216_s5, 8192 }
  0x14   :  { %s40_s16 = sshll.u32 %s1112_s15, 4  ;;  %p1060_p8 = scmp.ne.s32.totalorder %s1216_s5, %s1059_s19  ;;  %s41_s16 = int_to_ptr.vmem [resolvable:$true] %s40_s16 }
  0x15   :  { %p1063_p9 = scmp.lt.u32.totalorder %s1059_s19, %s1216_s5 }
  0x17   :  { %p1065_p10 = pnand %p1063_p9, %p1060_p8 }
  0x19   :  { %1068 = shalt.err (!%p1065_p10)
}
  0x1a   :  { %s1069_s24 = scalar_lea.vmem %s41_s16, 8192  ;;  %p1074_p12 = scmp.lt.s32.totalorder %s41_s16, %s41_s16 }
  0x1b   :  { %p1070_p11 = scmp.ne.s32.totalorder %s41_s16, %s1069_s24  ;;  %p1075_p13 = scmp.lt.s32.totalorder %s1069_s24, %s1069_s24 }
  0x1d   :  { %p1076_p0 = por %p1075_p13, %p1074_p12 }
  0x1f   :  { %p1077_p1 = pnand %p1076_p0, %p1070_p11 }
  0x21   :  { %1080 = shalt.err (!%p1077_p1)
}
  0x22   :  { %s1113_s3 = smov 256   ;;  %s1114_s25 = smov 16  }
  0x23   :  { %46 = dma.hbm_to_vmem [thread:$0]  %s1216_s5, 8192, %s41_s16, [#allocation6], %s1113_s3, %s1113_s3, %s1114_s25  }
  0x24   :  { %1103 = dma.done.wait [#allocation3], 2048  }
  0x25   :  { %1104 = vsyncadd [#allocation3], 4294965248 }
  0x26   :  { %1105 = dma.done.wait [#allocation6], 8192  }
  0x27   :  { %1106 = vsyncadd [#allocation6], 4294959104  ;;  %vm70_vm0 = vcmask 1040384   ;;  %v1115_v0 = vmov 0.0   ;;  %vm71_vm1 = vcmask 1041408   ;;  %v1116_v1 = vmov 65535  }
  0x28   :  { %900 = vmatprep.subr.bf16.mxu0 %v1115_v0  ;;  %v72_v2 = vsel %vm70_vm0, 4294967295, %v1116_v1  ;;  %vm1117_vm2 = vmmov 0   ;;  %v58_v4 = vld [vmem:[%s1212_s1] sm:$0x3]  ;;  %v917_v7 = vld [vmem:[#allocation2 + $0x4] ss:$8 sps:$4 sm:$0xff]  }
  0x29   :  { %902 = vmatprep.mubr.msk.bf16.mxu0 %vm1117_vm2, %v1115_v0  ;;  %v73_v3 = vsel %vm71_vm1, %v72_v2, 0  ;;  %v56_v5 = vld [vmem:[%s1211_s0] sm:$0xff]  ;;  %v920_v10 = vld [vmem:[#allocation2 + $0x14] ss:$8 sps:$4 sm:$0xff]   ;;  %vm66_vm3 = vcmask 23552   ;;  %229 = vmatprep.subr.bf16.mxu1 %v917_v7  ;;  %v1118_v24 = vmov 0  }
  0x2a   :  { %v75_v6 = vand.u32 %v73_v3, %v58_v4  ;;  %v919_v8 = vld [vmem:[#allocation2] ss:$8 sps:$4 sm:$0xff]   ;;  %v57_v9 = vpack.c.bf16 %v56_v5, %v56_v5  ;;  %v922_v11 = vld [vmem:[#allocation2 + $0x10] ss:$8 sps:$4 sm:$0xff]   ;;  %v923_v12 = vld [vmem:[#allocation2 + $0x24] ss:$8 sps:$4 sm:$0xff]   ;;  %261 = vmatprep.mubr.bf16.mxu1 %v1118_v24 }
  0x2b   :  { %230 = vmatpush1.bf16.msra.mxu1 %v919_v8  ;;  %v925_v13 = vld [vmem:[#allocation2 + $0x20] ss:$8 sps:$4 sm:$0xff]   ;;  %v926_v14 = vld [vmem:[#allocation2 + $0x34] ss:$8 sps:$4 sm:$0xff]   ;;  %v928_v15 = vld [vmem:[#allocation2 + $0x30] ss:$8 sps:$4 sm:$0xff]  }
  0x2c   :  { %901 = vmatpush3.bf16.msra.mxu0 %v75_v6  ;;  %231 = vmatprep.subr.bf16.mxu1 %v920_v10  ;;  %v929_v16 = vld [vmem:[#allocation2 + $0x44] ss:$8 sps:$4 sm:$0xff]   ;;  %v931_v17 = vld [vmem:[#allocation2 + $0x40] ss:$8 sps:$4 sm:$0xff]   ;;  %v932_v18 = vld [vmem:[#allocation2 + $0x54] ss:$8 sps:$4 sm:$0xff]  }
  0x2d   :  { %v934_v19 = vld [vmem:[#allocation2 + $0x50] ss:$8 sps:$4 sm:$0xff]   ;;  %v935_v20 = vld [vmem:[#allocation2 + $0x64] ss:$8 sps:$4 sm:$0xff]   ;;  %v937_v21 = vld [vmem:[#allocation2 + $0x60] ss:$8 sps:$4 sm:$0xff]  }
  0x2e   :  { %v938_v22 = vld [vmem:[#allocation2 + $0x74] ss:$8 sps:$4 sm:$0xff]   ;;  %v940_v23 = vld [vmem:[#allocation2 + $0x70] ss:$8 sps:$4 sm:$0xff]   ;;  %v812_v54 = vld [vmem:[%s1213_s2] ss:$0 sm:$0xff] }
  0x2f   :  { %903 = vmatmul.mubr.msk.bf16.vlgmr.msra.gmra.mrb[0].mxu0 %vm66_vm3, %v57_v9  ;;  %232 = vmatpush1.bf16.msra.mxu1 %v922_v11  ;;  %v941_v25 = vld [vmem:[#allocation5] ss:$16 sps:$4 sm:$0xff]   ;;  %v943_v26 = vld [vmem:[#allocation5 + $0x4] ss:$16 sps:$4 sm:$0xff]   ;;  %v946_v27 = vld [vmem:[#allocation5 + $0xc] ss:$16 sps:$4 sm:$0xff]  }
  0x30   :  { %233 = vmatprep.subr.bf16.mxu1 %v923_v12  ;;  %v949_v28 = vld [vmem:[#allocation5 + $0x24] ss:$16 sps:$4 sm:$0xff]   ;;  %684 = vmatprep.subr.bf16.mxu0 %v943_v26  ;;  %v947_v29 = vld [vmem:[#allocation5 + $0x20] ss:$16 sps:$4 sm:$0xff]   ;;  %v944_v62 = vld [vmem:[#allocation5 + $0x8] ss:$16 sps:$4 sm:$0xff]  }
  0x31   :  { %685 = vmatpush1.bf16.msra.mxu0 %v941_v25  ;;  %v955_v30 = vld [vmem:[#allocation5 + $0x44] ss:$16 sps:$4 sm:$0xff]   ;;  %v953_v31 = vld [vmem:[#allocation5 + $0x40] ss:$16 sps:$4 sm:$0xff]   ;;  %v952_v0 = vld [vmem:[#allocation5 + $0x2c] ss:$16 sps:$4 sm:$0xff]  }
  0x32   :  { %686 = vmatprep.subr.bf16.mxu0 %v949_v28  ;;  %v961_v32 = vld [vmem:[#allocation5 + $0x64] ss:$16 sps:$4 sm:$0xff]   ;;  %v959_v33 = vld [vmem:[#allocation5 + $0x60] ss:$16 sps:$4 sm:$0xff]   ;;  %v950_v1 = vld [vmem:[#allocation5 + $0x28] ss:$16 sps:$4 sm:$0xff]  }
  0x33   :  { %234 = vmatpush1.bf16.msra.mxu1 %v925_v13  ;;  %v967_v34 = vld [vmem:[#allocation5 + $0x84] ss:$16 sps:$4 sm:$0xff]   ;;  %v965_v35 = vld [vmem:[#allocation5 + $0x80] ss:$16 sps:$4 sm:$0xff]   ;;  %v958_v2 = vld [vmem:[#allocation5 + $0x4c] ss:$16 sps:$4 sm:$0xff]  }
  0x34   :  { %235 = vmatprep.subr.bf16.mxu1 %v926_v14  ;;  %v973_v36 = vld [vmem:[#allocation5 + $0xa4] ss:$16 sps:$4 sm:$0xff]   ;;  %v971_v37 = vld [vmem:[#allocation5 + $0xa0] ss:$16 sps:$4 sm:$0xff]   ;;  %v956_v3 = vld [vmem:[#allocation5 + $0x48] ss:$16 sps:$4 sm:$0xff]  }
  0x35   :  { %687 = vmatpush1.bf16.msra.mxu0 %v947_v29  ;;  %v979_v38 = vld [vmem:[#allocation5 + $0xc4] ss:$16 sps:$4 sm:$0xff]   ;;  %v977_v39 = vld [vmem:[#allocation5 + $0xc0] ss:$16 sps:$4 sm:$0xff]   ;;  %v964_v4 = vld [vmem:[#allocation5 + $0x6c] ss:$16 sps:$4 sm:$0xff]  }
  0x36   :  { %688 = vmatprep.subr.bf16.mxu0 %v955_v30  ;;  %v985_v40 = vld [vmem:[#allocation5 + $0xe4] ss:$16 sps:$4 sm:$0xff]   ;;  %v983_v41 = vld [vmem:[#allocation5 + $0xe0] ss:$16 sps:$4 sm:$0xff]   ;;  %v962_v5 = vld [vmem:[#allocation5 + $0x68] ss:$16 sps:$4 sm:$0xff]  }
  0x37   :  { %236 = vmatpush1.bf16.msra.mxu1 %v928_v15  ;;  %v991_v42 = vld [vmem:[#allocation5 + $0x104] ss:$16 sps:$4 sm:$0xff]   ;;  %v989_v43 = vld [vmem:[#allocation5 + $0x100] ss:$16 sps:$4 sm:$0xff]   ;;  %v970_v6 = vld [vmem:[#allocation5 + $0x8c] ss:$16 sps:$4 sm:$0xff]  }
  0x38   :  { %237 = vmatprep.subr.bf16.mxu1 %v929_v16  ;;  %v997_v44 = vld [vmem:[#allocation5 + $0x124] ss:$16 sps:$4 sm:$0xff]   ;;  %v995_v45 = vld [vmem:[#allocation5 + $0x120] ss:$16 sps:$4 sm:$0xff]   ;;  %v968_v7 = vld [vmem:[#allocation5 + $0x88] ss:$16 sps:$4 sm:$0xff]  }
  0x39   :  { %689 = vmatpush1.bf16.msra.mxu0 %v953_v31  ;;  %v1003_v46 = vld [vmem:[#allocation5 + $0x144] ss:$16 sps:$4 sm:$0xff]   ;;  %v1001_v47 = vld [vmem:[#allocation5 + $0x140] ss:$16 sps:$4 sm:$0xff]   ;;  %v976_v8 = vld [vmem:[#allocation5 + $0xac] ss:$16 sps:$4 sm:$0xff]  }
  0x3a   :  { %690 = vmatprep.subr.bf16.mxu0 %v961_v32  ;;  %v1009_v48 = vld [vmem:[#allocation5 + $0x164] ss:$16 sps:$4 sm:$0xff]   ;;  %v1007_v49 = vld [vmem:[#allocation5 + $0x160] ss:$16 sps:$4 sm:$0xff]   ;;  %v974_v9 = vld [vmem:[#allocation5 + $0xa8] ss:$16 sps:$4 sm:$0xff]  }
  0x3b   :  { %238 = vmatpush1.bf16.msra.mxu1 %v931_v17  ;;  %v1015_v50 = vld [vmem:[#allocation5 + $0x184] ss:$16 sps:$4 sm:$0xff]   ;;  %v1013_v51 = vld [vmem:[#allocation5 + $0x180] ss:$16 sps:$4 sm:$0xff]   ;;  %v982_v10 = vld [vmem:[#allocation5 + $0xcc] ss:$16 sps:$4 sm:$0xff]  }
  0x3c   :  { %239 = vmatprep.subr.bf16.mxu1 %v932_v18  ;;  %v1021_v52 = vld [vmem:[#allocation5 + $0x1a4] ss:$16 sps:$4 sm:$0xff]   ;;  %v1019_v53 = vld [vmem:[#allocation5 + $0x1a0] ss:$16 sps:$4 sm:$0xff]   ;;  %v980_v11 = vld [vmem:[#allocation5 + $0xc8] ss:$16 sps:$4 sm:$0xff]  }
  0x3d   :  { %691 = vmatpush1.bf16.msra.mxu0 %v959_v33  ;;  %v988_v12 = vld [vmem:[#allocation5 + $0xec] ss:$16 sps:$4 sm:$0xff]   ;;  %v986_v13 = vld [vmem:[#allocation5 + $0xe8] ss:$16 sps:$4 sm:$0xff]   ;;  %v1027_v26 = vld [vmem:[#allocation5 + $0x1c4] ss:$16 sps:$4 sm:$0xff]  }
  0x3e   :  { %692 = vmatprep.subr.bf16.mxu0 %v967_v34  ;;  %v994_v14 = vld [vmem:[#allocation5 + $0x10c] ss:$16 sps:$4 sm:$0xff]   ;;  %v992_v15 = vld [vmem:[#allocation5 + $0x108] ss:$16 sps:$4 sm:$0xff]   ;;  %v1025_v28 = vld [vmem:[#allocation5 + $0x1c0] ss:$16 sps:$4 sm:$0xff]   ;;  %v139_v34 = vlaneseq }
  0x3f   :  { %240 = vmatpush1.bf16.msra.mxu1 %v934_v19  ;;  %v1000_v16 = vld [vmem:[#allocation5 + $0x12c] ss:$16 sps:$4 sm:$0xff]   ;;  %v998_v17 = vld [vmem:[#allocation5 + $0x128] ss:$16 sps:$4 sm:$0xff]   ;;  %v1033_v30 = vld [vmem:[#allocation5 + $0x1e4] ss:$16 sps:$4 sm:$0xff]  }
  0x40   :  { %241 = vmatprep.subr.bf16.mxu1 %v935_v20  ;;  %v1006_v18 = vld [vmem:[#allocation5 + $0x14c] ss:$16 sps:$4 sm:$0xff]   ;;  %v1004_v19 = vld [vmem:[#allocation5 + $0x148] ss:$16 sps:$4 sm:$0xff]   ;;  %v1031_v32 = vld [vmem:[#allocation5 + $0x1e0] ss:$16 sps:$4 sm:$0xff]  }
  0x41   :  { %693 = vmatpush1.bf16.msra.mxu0 %v965_v35  ;;  %v1012_v20 = vld [vmem:[#allocation5 + $0x16c] ss:$16 sps:$4 sm:$0xff]   ;;  %v1022_v25 = vld [vmem:[#allocation5 + $0x1a8] ss:$16 sps:$4 sm:$0xff]   ;;  %v140_v35 = vshrl.u32 %v139_v34, 7  ;;  %s1119_s10 = smov [#allocation7]  }
  0x42   :  { %694 = vmatprep.subr.bf16.mxu0 %v973_v36  ;;  %v1024_v24 = vld [vmem:[#allocation5 + $0x1ac] ss:$16 sps:$4 sm:$0xff]   ;;  %v1028_v29 = vld [vmem:[#allocation5 + $0x1c8] ss:$16 sps:$4 sm:$0xff]   ;;  %s802_s11 = sshll.u32 %s1119_s10, 4  ;;  %s803_s11 = int_to_ptr.vmem [resolvable:$true] %s802_s11 }
  0x43   :  { %242 = vmatpush1.bf16.msra.mxu1 %v937_v21  ;;  %v1010_v21 = vld [vmem:[#allocation5 + $0x168] ss:$16 sps:$4 sm:$0xff]   ;;  %v1036_v31 = vld [vmem:[#allocation5 + $0x1ec] ss:$16 sps:$4 sm:$0xff]   ;;  %v141_v36 = vsub.s32 0, %v140_v35  ;;  %p1086_p3 = scmp.lt.s32.totalorder %s803_s11, %s803_s11 }
  0x44   :  { %243 = vmatprep.subr.bf16.mxu1 %v938_v22  ;;  %v1018_v22 = vld [vmem:[#allocation5 + $0x18c] ss:$16 sps:$4 sm:$0xff]   ;;  %v1034_v33 = vld [vmem:[#allocation5 + $0x1e8] ss:$16 sps:$4 sm:$0xff]  }
  0x45   :  { %695 = vmatpush1.bf16.msra.mxu0 %v971_v37  ;;  %v137_v37 = vld [vmem:[%s1215_s4] sm:$0x3] }
  0x46   :  { %696 = vmatprep.subr.bf16.mxu0 %v979_v38  ;;  %v145_v38 = vsub.s32 1, %v140_v35 }
  0x47   :  { %244 = vmatpush1.bf16.msra.mxu1 %v940_v23  ;;  %v1016_v23 = vld [vmem:[#allocation5 + $0x188] ss:$16 sps:$4 sm:$0xff]  }
  0x48   :  { %725 = vmatprep.subr.bf16.mxu1 %v946_v27  ;;  %v1030_v27 = vld [vmem:[#allocation5 + $0x1cc] ss:$16 sps:$4 sm:$0xff]  }
  0x49   :  { %697 = vmatpush1.bf16.msra.mxu0 %v977_v39  ;;  %v142_v39 = vrot.slane %v137_v37, %v141_v36 }
  0x4a   :  { %698 = vmatprep.subr.bf16.mxu0 %v985_v40  ;;  %v146_v40 = vrot.slane %v137_v37, %v145_v38 }
  0x4d   :  { %699 = vmatpush1.bf16.msra.mxu0 %v983_v41 }
  0x4e   :  { %700 = vmatprep.subr.bf16.mxu0 %v991_v42 }
  0x51   :  { %701 = vmatpush1.bf16.msra.mxu0 %v989_v43 }
  0x52   :  { %702 = vmatprep.subr.bf16.mxu0 %v997_v44 }
  0x55   :  { %703 = vmatpush1.bf16.msra.mxu0 %v995_v45 }
  0x56   :  { %704 = vmatprep.subr.bf16.mxu0 %v1003_v46 }
  0x59   :  { %705 = vmatpush1.bf16.msra.mxu0 %v1001_v47 }
  0x5a   :  { %706 = vmatprep.subr.bf16.mxu0 %v1009_v48 }
  0x5d   :  { %707 = vmatpush1.bf16.msra.mxu0 %v1007_v49 }
  0x5e   :  { %708 = vmatprep.subr.bf16.mxu0 %v1015_v50 }
  0x61   :  { %709 = vmatpush1.bf16.msra.mxu0 %v1013_v51 }
  0x62   :  { %710 = vmatprep.subr.bf16.mxu0 %v1021_v52 }
  0x65   :  { %711 = vmatpush1.bf16.msra.mxu0 %v1019_v53  ;;  %v354_v53 = vsub.s32 2, %v140_v35 }
  0x66   :  { %712 = vmatprep.subr.bf16.mxu0 %v1027_v26 }
  0x69   :  { %713 = vmatpush1.bf16.msra.mxu0 %v1025_v28 }
  0x6a   :  { %714 = vmatprep.subr.bf16.mxu0 %v1033_v30 }
  0x6d   :  { %715 = vmatpush1.bf16.msra.mxu0 %v1031_v32 }
 0x102   :  { %v111_v55 = vpop.f32.mrb[0].mxu0 }
 0x103   :  { %v112_v56 = vadd.f32 %v812_v54, %v111_v55  ;;  %v904_v57 = vpop.f32.mrb[1].mxu0  ;;  %v342_v54 = vld [vmem:[%s1217_s6] sm:$0xf]  ;;  %v358_v55 = vsub.s32 3, %v140_v35  ;;  %s1081_s6 = scalar_lea.vmem %s803_s11, 256 }
 0x104   :  { %v114_v58 = vpop.f32.mrb[2].mxu0  ;;  %v355_v57 = vrot.slane %v342_v54, %v354_v53  ;;  %p1082_p2 = scmp.ne.s32.totalorder %s803_s11, %s1081_s6  ;;  %p1087_p4 = scmp.lt.s32.totalorder %s1081_s6, %s1081_s6 }
 0x105   :  { %vm117_vm4 = vcmp.gt.f32.partialorder %v112_v56, 0.0  ;;  %v118_v59 = vmul.f32 0.1, %v112_v56  ;;  %v905_v60 = vpop.f32.mrb[3].mxu0  ;;  %v351_v58 = vrot.slane %v342_v54, %v145_v38 }
 0x106   :  { %p1088_p5 = por %p1087_p4, %p1086_p3 }
 0x107   :  { %v119_v61 = vsel %vm117_vm4, %v112_v56, %v118_v59  ;;  %v347_v56 = vrot.slane %v342_v54, %v141_v36  ;;  %v359_v59 = vrot.slane %v342_v54, %v358_v55 }
 0x108   :  { %v120_v63 = vpack.c.bf16 %v119_v61, %v119_v61  ;;  %p1089_p6 = pnand %p1088_p5, %p1082_p2 }
 0x10a   :  { %262 = vmatmul.mubr.bf16.vlgmr.msra.gmra.mrb[0].mxu1 %v120_v63 }
 0x10b   :  { %726 = vmatpush1.bf16.msra.mxu1 %v944_v62 }
 0x10c   :  { %727 = vmatprep.subr.bf16.mxu1 %v952_v0 }
 0x10f   :  { %728 = vmatpush1.bf16.msra.mxu1 %v950_v1 }
 0x110   :  { %729 = vmatprep.subr.bf16.mxu1 %v958_v2 }
 0x113   :  { %730 = vmatpush1.bf16.msra.mxu1 %v956_v3 }
 0x114   :  { %731 = vmatprep.subr.bf16.mxu1 %v964_v4 }
 0x117   :  { %732 = vmatpush1.bf16.msra.mxu1 %v962_v5 }
 0x118   :  { %733 = vmatprep.subr.bf16.mxu1 %v970_v6 }
 0x11b   :  { %734 = vmatpush1.bf16.msra.mxu1 %v968_v7 }
 0x11c   :  { %735 = vmatprep.subr.bf16.mxu1 %v976_v8 }
 0x11f   :  { %736 = vmatpush1.bf16.msra.mxu1 %v974_v9 }
 0x120   :  { %737 = vmatprep.subr.bf16.mxu1 %v982_v10 }
 0x123   :  { %738 = vmatpush1.bf16.msra.mxu1 %v980_v11 }
 0x124   :  { %739 = vmatprep.subr.bf16.mxu1 %v988_v12 }
 0x127   :  { %740 = vmatpush1.bf16.msra.mxu1 %v986_v13 }
 0x128   :  { %741 = vmatprep.subr.bf16.mxu1 %v994_v14 }
 0x12b   :  { %742 = vmatpush1.bf16.msra.mxu1 %v992_v15 }
 0x12c   :  { %743 = vmatprep.subr.bf16.mxu1 %v1000_v16 }
 0x12f   :  { %744 = vmatpush1.bf16.msra.mxu1 %v998_v17 }
 0x130   :  { %745 = vmatprep.subr.bf16.mxu1 %v1006_v18 }
 0x133   :  { %746 = vmatpush1.bf16.msra.mxu1 %v1004_v19 }
 0x134   :  { %747 = vmatprep.subr.bf16.mxu1 %v1012_v20 }
 0x137   :  { %748 = vmatpush1.bf16.msra.mxu1 %v1010_v21 }
 0x138   :  { %749 = vmatprep.subr.bf16.mxu1 %v1018_v22 }
 0x13b   :  { %750 = vmatpush1.bf16.msra.mxu1 %v1016_v23 }
 0x13c   :  { %751 = vmatprep.subr.bf16.mxu1 %v1024_v24 }
 0x13f   :  { %752 = vmatpush1.bf16.msra.mxu1 %v1022_v25 }
 0x140   :  { %753 = vmatprep.subr.bf16.mxu1 %v1030_v27 }
 0x143   :  { %754 = vmatpush1.bf16.msra.mxu1 %v1028_v29 }
 0x144   :  { %755 = vmatprep.subr.bf16.mxu1 %v1036_v31 }
 0x147   :  { %756 = vmatpush1.bf16.msra.mxu1 %v1034_v33 }
 0x1dd   :  { %v263_v41 = vpop.f32.mrb[0].mxu1 }
 0x1de   :  { %v264_v42 = vadd.f32 %v263_v41, %v142_v39  ;;  %v265_v43 = vpop.f32.mrb[1].mxu1 }
 0x1df   :  { %v266_v44 = vadd.f32 %v265_v43, %v146_v40  ;;  %v267_v45 = vpop.f32.mrb[2].mxu1 }
 0x1e0   :  { %vm270_vm5 = vcmp.gt.f32.partialorder %v264_v42, 0.0  ;;  %v272_v46 = vmul.f32 0.1, %v264_v42  ;;  %v268_v47 = vpop.f32.mrb[3].mxu1 }
 0x1e1   :  { %vm271_vm6 = vcmp.gt.f32.partialorder %v266_v44, 0.0  ;;  %v273_v48 = vmul.f32 0.1, %v266_v44 }
 0x1e2   :  { %v274_v49 = vsel %vm270_vm5, %v264_v42, %v272_v46 }
 0x1e3   :  { %v275_v50 = vsel %vm271_vm6, %v266_v44, %v273_v48  ;;  %v276_v52 = vpack.c.bf16 %v274_v49, %v274_v49 }
 0x1e4   :  { %v277_v51 = vpack.c.bf16 %v275_v50, %v275_v50 }
 0x1e6   :  { %716 = vmatprep.mubr.bf16.mxu0 %v277_v51  ;;  %757 = vmatprep.mubr.bf16.mxu1 %v277_v51 }
 0x1e7   :  { %717 = vmatmul.mubr.bf16.vlgmr.msra.gmra.mrb[4].mxu0 %v276_v52  ;;  %758 = vmatmul.mubr.bf16.vlgmr.msra.gmra.mrb[4].mxu1 %v276_v52 }
 0x2ba   :  { %v718_v60 = vpop.f32.mrb[4].mxu0  ;;  %v759_v61 = vpop.f32.mrb[4].mxu1 }
 0x2bb   :  { %v719_v62 = vadd.f32 %v718_v60, %v347_v56  ;;  %v760_v63 = vadd.f32 %v759_v61, %v355_v57  ;;  %v720_v0 = vpop.f32.mrb[5].mxu0  ;;  %v761_v1 = vpop.f32.mrb[5].mxu1 }
 0x2bc   :  { %v721_v2 = vadd.f32 %v720_v0, %v351_v58  ;;  %v762_v3 = vadd.f32 %v761_v1, %v359_v59  ;;  %v722_v4 = vpop.f32.mrb[6].mxu0  ;;  %v763_v5 = vpop.f32.mrb[6].mxu1 }
 0x2bd   :  { %vm766_vm7 = vcmp.gt.f32.partialorder %v719_v62, 0.0  ;;  %v770_v6 = vmul.f32 0.1, %v719_v62  ;;  %vm768_vm8 = vcmp.gt.f32.partialorder %v760_v63, 0.0  ;;  %v772_v7 = vmul.f32 0.1, %v760_v63 }
 0x2be   :  { %vm767_vm9 = vcmp.gt.f32.partialorder %v721_v2, 0.0  ;;  %v771_v8 = vmul.f32 0.1, %v721_v2  ;;  %vm769_vm10 = vcmp.gt.f32.partialorder %v762_v3, 0.0  ;;  %v773_v9 = vmul.f32 0.1, %v762_v3 }
 0x2bf   :  { %v774_v10 = vsel %vm766_vm7, %v719_v62, %v770_v6  ;;  %v776_v11 = vsel %vm768_vm8, %v760_v63, %v772_v7  ;;  %v723_v12 = vpop.f32.mrb[7].mxu0  ;;  %v764_v13 = vpop.f32.mrb[7].mxu1 }
 0x2c0   :  { %v775_v14 = vsel %vm767_vm9, %v721_v2, %v771_v8  ;;  %v777_v15 = vsel %vm769_vm10, %v762_v3, %v773_v9 }
 0x2c1   :  { %v896_v16 = vpack.c.bf16 %v775_v14, %v774_v10  ;;  %v897_v17 = vpack.c.bf16 %v777_v15, %v776_v11 }
 0x2c3   :  { %794 = vst [vmem:[#allocation7] sm:$0xff] %v896_v16  ;;  %795 = vst [vmem:[#allocation7 + $0x8] sm:$0xff] %v897_v17 }
 0x2c4   :  { %1092 = shalt.err (!%p1089_p6)
}
 0x2c5   :  { %s1093_s14 = scalar_lea.hbm %s1218_s7, 256 }
 0x2c6   :  { %p1094_p7 = scmp.ne.s32.totalorder %s1218_s7, %s1093_s14  ;;  %p1097_p8 = scmp.lt.u32.totalorder %s1093_s14, %s1218_s7 }
 0x2c8   :  { %p1099_p9 = pnand %p1097_p8, %p1094_p7 }
 0x2ca   :  { %1102 = shalt.err (!%p1099_p9)
}
 0x2cb   :  { %805 = dma.vmem_to_hbm [thread:$0]  %s803_s11, 256, %s1218_s7, [#allocation4]  }
 0x2cc   :  { %1107 = dma.done.wait [#allocation4], 256  }
 0x2cd   :  { %1108 = vsyncadd [#allocation4], 4294967040 }
 0x2ce   :  { %809 = vsyncpa [#allocation3], 1 }
 0x2cf   :  { %810 = vsyncpa [#allocation6], 1 }
 0x2d0   :  { %811 = vsyncpa [#allocation4], 1 }

</bundles_post_ra>
